<compile_context>
chip_gen: v7x
topology: tpu7x:2x2x1
jax: 0.10.0
libtpu: 0.0.40
codegen_flags: <defaults>
</compile_context>

<pallas_src>
import math

import jax
import jax.numpy as jnp
from jax.experimental import pallas as pl
from jax.experimental.pallas import tpu as pltpu


def _round_up(a: int, b: int) -> int:
    return (a + b - 1) // b * b


def _ffn_kernel(x_ref, w1_ref, b1_ref, w2_ref, b2_ref, o_ref, acc_ref):
    f = pl.program_id(1)

    @pl.when(f == 0)
    def _init():
        acc_ref[...] = jnp.zeros_like(acc_ref)

    # linear_1 chunk: [tm, D] @ [D, tf] on the MXU (bf16 in, f32 accumulate).
    h = jnp.dot(x_ref[...], w1_ref[...], preferred_element_type=jnp.float32)
    h = h + b1_ref[...]

    # NewGELU in f32: 0.5 * x * (1 + tanh(sqrt(2/pi) * (x + 0.044715 * x^3)))
    c = math.sqrt(2.0 / math.pi)
    h = 0.5 * h * (1.0 + jnp.tanh(c * (h + 0.044715 * h * h * h)))

    # Dropout is identity in eval/inference mode.
    # TODO(synk): training-mode dropout (pltpu.prng_random_bits mask) not implemented.

    # linear_2 chunk, accumulated over the dim_ff grid axis: [tm, tf] @ [tf, D]
    acc_ref[...] += jnp.dot(h.astype(w2_ref.dtype), w2_ref[...],
                            preferred_element_type=jnp.float32)

    @pl.when(f == pl.num_programs(1) - 1)
    def _finalize():
        o_ref[...] = (acc_ref[...] + b2_ref[...]).astype(o_ref.dtype)


def feed_forward(x, w1, b1, w2, b2, *, tm=256, tf=512, compute_dtype=jnp.bfloat16):
    """x: [batch, seq, d_model]; w1: [d_model, dim_ff]; w2: [dim_ff, d_model].
    Returns [batch, seq, d_model] in x.dtype."""
    batch, seq, d_model = x.shape
    dim_ff = w1.shape[1]
    M = batch * seq
    out_dtype = x.dtype

    # Lane-dense / tile-friendly padded sizes.
    D_pad = _round_up(d_model, 128)
    F_pad = _round_up(dim_ff, 128)

    # Row tile: as large as requested but no larger than needed for small M.
    tm = min(_round_up(tm, 8), _round_up(M, 8))
    M_pad = _round_up(M, tm)

    # dim_ff chunk: multiple of 128, evenly dividing the padded ff dimension.
    tf = min(_round_up(tf, 128), F_pad)
    F_pad = _round_up(F_pad, tf)

    # Zero-padded, dtype-cast operands (padding contributes exact zeros).
    x2 = jnp.zeros((M_pad, D_pad), compute_dtype)
    x2 = x2.at[:M, :d_model].set(x.reshape(M, d_model).astype(compute_dtype))
    w1p = jnp.zeros((D_pad, F_pad), compute_dtype).at[:d_model, :dim_ff].set(
        w1.astype(compute_dtype))
    w2p = jnp.zeros((F_pad, D_pad), compute_dtype).at[:dim_ff, :d_model].set(
        w2.astype(compute_dtype))
    b1p = jnp.zeros((1, F_pad), jnp.float32).at[:, :dim_ff].set(
        b1.reshape(1, dim_ff).astype(jnp.float32))
    b2p = jnp.zeros((1, D_pad), jnp.float32).at[:, :d_model].set(
        b2.reshape(1, d_model).astype(jnp.float32))

    grid = (M_pad // tm, F_pad // tf)

    itemsize = jnp.dtype(compute_dtype).itemsize
    cost = pl.CostEstimate(
        flops=int(4 * M_pad * D_pad * F_pad),
        transcendentals=int(M_pad * F_pad),
        bytes_accessed=int(M_pad * D_pad * itemsize            # x
                           + D_pad * F_pad * itemsize          # W1
                           + F_pad * D_pad * itemsize          # W2
                           + (F_pad + D_pad) * 4               # biases
                           + M_pad * D_pad * jnp.dtype(out_dtype).itemsize),  # out
    )

    out = pl.pallas_call(
        _ffn_kernel,
        out_shape=jax.ShapeDtypeStruct((M_pad, D_pad), out_dtype),
        grid_spec=pltpu.PrefetchScalarGridSpec(
            num_scalar_prefetch=0,
            grid=grid,
            in_specs=[
                pl.BlockSpec((tm, D_pad), lambda i, f: (i, 0)),   # x row tile
                pl.BlockSpec((D_pad, tf), lambda i, f: (0, f)),   # W1 ff-chunk
                pl.BlockSpec((1, tf), lambda i, f: (0, f)),       # b1 ff-chunk
                pl.BlockSpec((tf, D_pad), lambda i, f: (f, 0)),   # W2 ff-chunk
                pl.BlockSpec((1, D_pad), lambda i, f: (0, 0)),    # b2 (resident)
            ],
            out_specs=pl.BlockSpec((tm, D_pad), lambda i, f: (i, 0)),
            scratch_shapes=[pltpu.VMEM((tm, D_pad), jnp.float32)],
        ),
        compiler_params=pltpu.CompilerParams(
            dimension_semantics=("parallel", "arbitrary"),
            vmem_limit_bytes=64 * 1024 * 1024,
        ),
        cost_estimate=cost,
    )(x2, w1p, b1p, w2p, b2p)

    return out[:M, :d_model].reshape(batch, seq, d_model)


def _reference_f32(x, w1, b1, w2, b2):
    h = jnp.dot(x, w1) + b1
    c = math.sqrt(2.0 / math.pi)
    h = 0.5 * h * (1.0 + jnp.tanh(c * (h + 0.044715 * h ** 3)))
    return jnp.dot(h, w2) + b2


def _reference_bf16(x, w1, b1, w2, b2):
    # Mirrors the kernel's numerics: bf16 MXU inputs, f32 accumulation, f32 bias+GELU.
    h = jnp.dot(x.astype(jnp.bfloat16), w1.astype(jnp.bfloat16),
                preferred_element_type=jnp.float32) + b1
    c = math.sqrt(2.0 / math.pi)
    h = 0.5 * h * (1.0 + jnp.tanh(c * (h + 0.044715 * h ** 3)))
    y = jnp.dot(h.astype(jnp.bfloat16), w2.astype(jnp.bfloat16),
                preferred_element_type=jnp.float32) + b2
    return y.astype(x.dtype)


if __name__ == "__main__":
    # Shapes implied by the module: x [batch, seq, d_model]; d_model, dim_feedforward.
    batch, seq, d_model, dim_ff = 2, 8, 32, 64

    key = jax.random.PRNGKey(0)
    kx, kw1, kb1, kw2, kb2 = jax.random.split(key, 5)

    x = jax.random.normal(kx, (batch, seq, d_model), dtype=jnp.float32)
    # Deterministic parameter init (mimics nn.Linear uniform bounds).
    lim1 = 1.0 / math.sqrt(d_model)
    lim2 = 1.0 / math.sqrt(dim_ff)
    w1 = jax.random.uniform(kw1, (d_model, dim_ff), minval=-lim1, maxval=lim1, dtype=jnp.float32)
    b1 = jax.random.uniform(kb1, (dim_ff,), minval=-lim1, maxval=lim1, dtype=jnp.float32)
    w2 = jax.random.uniform(kw2, (dim_ff, d_model), minval=-lim2, maxval=lim2, dtype=jnp.float32)
    b2 = jax.random.uniform(kb2, (d_model,), minval=-lim2, maxval=lim2, dtype=jnp.float32)

    y = feed_forward(x, w1, b1, w2, b2)
    y = jax.block_until_ready(y)
    assert y.shape == (batch, seq, d_model)

    # Tight check vs. a numerically-consistent (bf16-MXU) reference.
    y_ref_bf16 = _reference_bf16(x, w1, b1, w2, b2)
    assert jnp.allclose(y, y_ref_bf16, atol=1e-3, rtol=1e-3), "mismatch vs bf16-consistent reference"

    # Looser check vs. the exact f32 PyTorch-semantics reference (bf16 rounding only).
    y_ref = _reference_f32(x, w1, b1, w2, b2)
    assert jnp.allclose(y, y_ref, atol=5e-2, rtol=5e-2), "mismatch vs f32 reference"

    print("KERNEL_OK")
</pallas_src>

<mosaic_0001>
module attributes {stable_mosaic.version = 11 : i64} {
  func.func @_ffn_kernel(%arg0: i32, %arg1: i32, %arg2: memref<16x128xbf16, #tpu.memory_space<vmem>>, %arg3: memref<128x128xbf16, #tpu.memory_space<vmem>>, %arg4: memref<1x128xf32, #tpu.memory_space<vmem>>, %arg5: memref<128x128xbf16, #tpu.memory_space<vmem>>, %arg6: memref<1x128xf32, #tpu.memory_space<vmem>>, %arg7: memref<16x128xf32, #tpu.memory_space<vmem>>, %arg8: memref<16x128xf32, #tpu.memory_space<vmem>>) attributes {dimension_semantics = [#tpu.dimension_semantics<parallel>, #tpu.dimension_semantics<arbitrary>], iteration_bounds = array<i64: 1, 1>, scalar_prefetch = 0 : i64, scratch_operands = 1 : i64, tpu.core_type = #tpu.core_type<tc>, window_params = [{transform_indices = @transform_0, window_bounds = array<i64: 16, 128>}, {transform_indices = @transform_1, window_bounds = array<i64: 128, 128>}, {transform_indices = @transform_2, window_bounds = array<i64: 1, 128>}, {transform_indices = @transform_3, window_bounds = array<i64: 128, 128>}, {pipeline_mode = #tpu.pipeline_mode<synchronous>, transform_indices = @transform_4, window_bounds = array<i64: 1, 128>}, {transform_indices = @transform_5, window_bounds = array<i64: 16, 128>}]} {
    %c0_i32 = arith.constant 0 : i32
    %0 = arith.cmpi eq, %arg1, %c0_i32 : i32
    %1 = arith.extui %0 : i1 to i32
    %c0_i32_0 = arith.constant 0 : i32
    %2 = arith.cmpi ne, %1, %c0_i32_0 : i32
    scf.if %2 {
      %cst_19 = arith.constant 0.000000e+00 : f32
      %31 = vector.broadcast %cst_19 : f32 to vector<16x128xf32>
      %c0_20 = arith.constant 0 : index
      %c0_21 = arith.constant 0 : index
      %32 = vector.load %arg8[%c0_20, %c0_21] : memref<16x128xf32, #tpu.memory_space<vmem>>, vector<16x128xf32>
      tpu.vector_store %arg8[%c0_20, %c0_21], %31 {strides = array<i32>} : memref<16x128xf32, #tpu.memory_space<vmem>>, vector<16x128xf32>,
    } else {
    }
    %c0 = arith.constant 0 : index
    %c0_1 = arith.constant 0 : index
    %3 = vector.load %arg2[%c0, %c0_1] : memref<16x128xbf16, #tpu.memory_space<vmem>>, vector<16x128xbf16>
    %c0_2 = arith.constant 0 : index
    %c0_3 = arith.constant 0 : index
    %4 = vector.load %arg3[%c0_2, %c0_3] : memref<128x128xbf16, #tpu.memory_space<vmem>>, vector<128x128xbf16>
    %cst = arith.constant dense<0.000000e+00> : vector<16x128xf32>
    %5 = tpu.matmul %3, %4, %cst {dimension_numbers = #tpu.dot_dimension_numbers<[1], [0], [0], [1], [0, 0, 1, 1], [], []>} : vector<16x128xbf16>, vector<128x128xbf16>, vector<16x128xf32> -> vector<16x128xf32>
    %c0_4 = arith.constant 0 : index
    %c0_5 = arith.constant 0 : index
    %6 = vector.load %arg4[%c0_4, %c0_5] : memref<1x128xf32, #tpu.memory_space<vmem>>, vector<1x128xf32>
    %7 = vector.broadcast %6 : vector<1x128xf32> to vector<16x128xf32>
    %8 = arith.addf %5, %7 : vector<16x128xf32>
    %cst_6 = arith.constant 5.000000e-01 : f32
    %9 = vector.broadcast %cst_6 : f32 to vector<16x128xf32>
    %10 = arith.mulf %9, %8 : vector<16x128xf32>
    %cst_7 = arith.constant 4.471500e-02 : f32
    %11 = vector.broadcast %cst_7 : f32 to vector<16x128xf32>
    %12 = arith.mulf %11, %8 : vector<16x128xf32>
    %13 = arith.mulf %12, %8 : vector<16x128xf32>
    %14 = arith.mulf %13, %8 : vector<16x128xf32>
    %15 = arith.addf %8, %14 : vector<16x128xf32>
    %cst_8 = arith.constant 0.797884583 : f32
    %16 = vector.broadcast %cst_8 : f32 to vector<16x128xf32>
    %17 = arith.mulf %16, %15 : vector<16x128xf32>
    %18 = math.tanh %17 : vector<16x128xf32>
    %cst_9 = arith.constant 1.000000e+00 : f32
    %19 = vector.broadcast %cst_9 : f32 to vector<16x128xf32>
    %20 = arith.addf %19, %18 : vector<16x128xf32>
    %21 = arith.mulf %10, %20 : vector<16x128xf32>
    %c0_10 = arith.constant 0 : index
    %c0_11 = arith.constant 0 : index
    %22 = vector.load %arg8[%c0_10, %c0_11] : memref<16x128xf32, #tpu.memory_space<vmem>>, vector<16x128xf32>
    %23 = arith.truncf %21 : vector<16x128xf32> to vector<16x128xbf16>
    %c0_12 = arith.constant 0 : index
    %c0_13 = arith.constant 0 : index
    %24 = vector.load %arg5[%c0_12, %c0_13] : memref<128x128xbf16, #tpu.memory_space<vmem>>, vector<128x128xbf16>
    %cst_14 = arith.constant dense<0.000000e+00> : vector<16x128xf32>
    %25 = tpu.matmul %23, %24, %cst_14 {dimension_numbers = #tpu.dot_dimension_numbers<[1], [0], [0], [1], [0, 0, 1, 1], [], []>} : vector<16x128xbf16>, vector<128x128xbf16>, vector<16x128xf32> -> vector<16x128xf32>
    %26 = arith.addf %22, %25 : vector<16x128xf32>
    %c0_15 = arith.constant 0 : index
    %c0_16 = arith.constant 0 : index
    %27 = vector.load %arg8[%c0_15, %c0_16] : memref<16x128xf32, #tpu.memory_space<vmem>>, vector<16x128xf32>
    tpu.vector_store %arg8[%c0_15, %c0_16], %26 {strides = array<i32>} : memref<16x128xf32, #tpu.memory_space<vmem>>, vector<16x128xf32>,
    %c0_i32_17 = arith.constant 0 : i32
    %28 = arith.cmpi eq, %arg1, %c0_i32_17 : i32
    %29 = arith.extui %28 : i1 to i32
    %c0_i32_18 = arith.constant 0 : i32
    %30 = arith.cmpi ne, %29, %c0_i32_18 : i32
    scf.if %30 {
      %c0_19 = arith.constant 0 : index
      %c0_20 = arith.constant 0 : index
      %31 = vector.load %arg8[%c0_19, %c0_20] : memref<16x128xf32, #tpu.memory_space<vmem>>, vector<16x128xf32>
      %c0_21 = arith.constant 0 : index
      %c0_22 = arith.constant 0 : index
      %32 = vector.load %arg6[%c0_21, %c0_22] : memref<1x128xf32, #tpu.memory_space<vmem>>, vector<1x128xf32>
      %33 = vector.broadcast %32 : vector<1x128xf32> to vector<16x128xf32>
      %34 = arith.addf %31, %33 : vector<16x128xf32>
      %c0_23 = arith.constant 0 : index
      %c0_24 = arith.constant 0 : index
      %35 = vector.load %arg7[%c0_23, %c0_24] : memref<16x128xf32, #tpu.memory_space<vmem>>, vector<16x128xf32>
      tpu.vector_store %arg7[%c0_23, %c0_24], %34 {strides = array<i32>} : memref<16x128xf32, #tpu.memory_space<vmem>>, vector<16x128xf32>,
    } else {
    }
    return
  }
  func.func @transform_0(%arg0: i32, %arg1: i32) -> (i32, i32) {
    %c0_i32 = arith.constant 0 : i32
    %c0_i32_0 = arith.constant 0 : i32
    return %arg0, %c0_i32 : i32, i32
  }
  func.func @transform_1(%arg0: i32, %arg1: i32) -> (i32, i32) {
    %c0_i32 = arith.constant 0 : i32
    %c0_i32_0 = arith.constant 0 : i32
    return %c0_i32, %arg1 : i32, i32
  }
  func.func @transform_2(%arg0: i32, %arg1: i32) -> (i32, i32) {
    %c0_i32 = arith.constant 0 : i32
    %c0_i32_0 = arith.constant 0 : i32
    return %c0_i32, %arg1 : i32, i32
  }
  func.func @transform_3(%arg0: i32, %arg1: i32) -> (i32, i32) {
    %c0_i32 = arith.constant 0 : i32
    %c0_i32_0 = arith.constant 0 : i32
    return %arg1, %c0_i32 : i32, i32
  }
  func.func @transform_4(%arg0: i32, %arg1: i32) -> (i32, i32) {
    %c0_i32 = arith.constant 0 : i32
    %c0_i32_0 = arith.constant 0 : i32
    %c0_i32_1 = arith.constant 0 : i32
    return %c0_i32, %c0_i32_0 : i32, i32
  }
  func.func @transform_5(%arg0: i32, %arg1: i32) -> (i32, i32) {
    %c0_i32 = arith.constant 0 : i32
    %c0_i32_0 = arith.constant 0 : i32
    return %arg0, %c0_i32 : i32, i32
  }
}

</mosaic_0001>

<bundles_post_ra>
// kernel: tpu_custom_call.1
= control target key start
LH: loop header
LB: loop body
LE: loop exit
PB: predicated region body
PF: predicated region fallthrough
CT: control target
= control target key end

     0   :  { %10 = vsyncpa [#allocation4], 0  ;;  %s757_s0 = inlined_call_operand.hbm [shape: bf16[16,128], index: 0, kind: input, shape index: {}]   ;;  %s758_s1 = inlined_call_operand.hbm [shape: bf16[128,128], index: 1, kind: input, shape index: {}]   ;;  %s759_s2 = inlined_call_operand.hbm [shape: f32[1,128], index: 2, kind: input, shape index: {}]   ;;  %s760_s3 = inlined_call_operand.hbm [shape: bf16[128,128], index: 3, kind: input, shape index: {}]   ;;  %s761_s4 = inlined_call_operand.hbm [shape: f32[1,128], index: 4, kind: input, shape index: {}]   ;;  %s762_s5 = inlined_call_operand.hbm [shape: f32[16,128], index: 5, kind: output, shape index: {}]  }
   0x1   :  { %11 = vsyncpa [#allocation7], 0 }
   0x2   :  { %12 = vsyncpa [#allocation10], 0 }
   0x3   :  { %13 = vsyncpa [#allocation5], 0  ;;  %s627_s18 = smov [#allocation6]   ;;  %s628_s20 = smov [#allocation9]  }
   0x4   :  { %s31_s19 = sshll.u32 %s627_s18, 4  ;;  %s53_s21 = sshll.u32 %s628_s20, 4  ;;  %s32_s19 = int_to_ptr.vmem [resolvable:$true] %s31_s19  ;;  %s669_s21 = int_to_ptr.vmem [resolvable:$true] %s53_s21 }
   0x5   :  { %s487_s24 = scalar_lea.hbm %s758_s1, 1024 }
   0x6   :  { %p488_p0 = scmp.ne.s32.totalorder %s758_s1, %s487_s24  ;;  %p491_p1 = scmp.lt.u32.totalorder %s487_s24, %s758_s1 }
   0x8   :  { %p493_p2 = pnand %p491_p1, %p488_p0 }
   0xa   :  { %496 = shalt.err (!%p493_p2)
}
   0xb   :  { %s497_s29 = scalar_lea.vmem %s32_s19, 1024  ;;  %p502_p4 = scmp.lt.s32.totalorder %s32_s19, %s32_s19 }
   0xc   :  { %p498_p3 = scmp.ne.s32.totalorder %s32_s19, %s497_s29  ;;  %p503_p5 = scmp.lt.s32.totalorder %s497_s29, %s497_s29 }
   0xe   :  { %p504_p6 = por %p503_p5, %p502_p4 }
  0x10   :  { %p505_p7 = pnand %p504_p6, %p498_p3 }
  0x12   :  { %508 = shalt.err (!%p505_p7)
}
  0x13   :  { %s629_s30 = smov 64   ;;  %s630_s6 = smov 4  }
  0x14   :  { %37 = dma.hbm_to_vmem [thread:$0]  %s758_s1, 1024, %s32_s19, [#allocation7], %s629_s30, %s629_s30, %s630_s6  }
  0x15   :  { %s509_s11 = scalar_lea.hbm %s760_s3, 1024 }
  0x16   :  { %p510_p8 = scmp.ne.s32.totalorder %s760_s3, %s509_s11  ;;  %p513_p9 = scmp.lt.u32.totalorder %s509_s11, %s760_s3 }
  0x18   :  { %p515_p10 = pnand %p513_p9, %p510_p8 }
  0x1a   :  { %518 = shalt.err (!%p515_p10)
}
  0x1b   :  { %s519_s16 = scalar_lea.vmem %s669_s21, 1024  ;;  %p524_p12 = scmp.lt.s32.totalorder %s669_s21, %s669_s21 }
  0x1c   :  { %p520_p11 = scmp.ne.s32.totalorder %s669_s21, %s519_s16  ;;  %p525_p13 = scmp.lt.s32.totalorder %s519_s16, %s519_s16 }
  0x1e   :  { %p526_p0 = por %p525_p13, %p524_p12 }
  0x20   :  { %p527_p1 = pnand %p526_p0, %p520_p11 }
  0x22   :  { %530 = shalt.err (!%p527_p1)
}
  0x23   :  { %59 = dma.hbm_to_vmem [thread:$0]  %s760_s3, 1024, %s669_s21, [#allocation10], %s629_s30, %s629_s30, %s630_s6  }
  0x24   :  { %s631_s18 = smov [#allocation3]   ;;  %s632_s20 = smov [#allocation8]  }
  0x25   :  { %s19_s19 = sshll.u32 %s631_s18, 4  ;;  %s44_s22 = sshll.u32 %s632_s20, 4  ;;  %s20_s19 = int_to_ptr.vmem [resolvable:$true] %s19_s19  ;;  %s45_s22 = int_to_ptr.vmem [resolvable:$true] %s44_s22 }
  0x26   :  { %s531_s25 = scalar_lea.hbm %s757_s0, 128 }
  0x27   :  { %p532_p2 = scmp.ne.s32.totalorder %s757_s0, %s531_s25  ;;  %p535_p3 = scmp.lt.u32.totalorder %s531_s25, %s757_s0 }
  0x29   :  { %p537_p4 = pnand %p535_p3, %p532_p2 }
  0x2b   :  { %540 = shalt.err (!%p537_p4)
}
  0x2c   :  { %s541_s3 = scalar_lea.vmem %s20_s19, 128  ;;  %p546_p6 = scmp.lt.s32.totalorder %s20_s19, %s20_s19 }
  0x2d   :  { %p542_p5 = scmp.ne.s32.totalorder %s20_s19, %s541_s3  ;;  %p547_p7 = scmp.lt.s32.totalorder %s541_s3, %s541_s3 }
  0x2f   :  { %p548_p8 = por %p547_p7, %p546_p6 }
  0x31   :  { %p549_p9 = pnand %p548_p8, %p542_p5 }
  0x33   :  { %552 = shalt.err (!%p549_p9)
}
  0x34   :  { %25 = dma.hbm_to_vmem [thread:$0]  %s757_s0, 128, %s20_s19, [#allocation4], %s629_s30, %s629_s30, %s630_s6  }
  0x35   :  { %s553_s10 = scalar_lea.hbm %s759_s2, 16 }
  0x36   :  { %p554_p10 = scmp.ne.s32.totalorder %s759_s2, %s553_s10  ;;  %p557_p11 = scmp.lt.u32.totalorder %s553_s10, %s759_s2 }
  0x38   :  { %p559_p12 = pnand %p557_p11, %p554_p10 }
  0x3a   :  { %562 = shalt.err (!%p559_p12)
}
  0x3b   :  { %s563_s15 = scalar_lea.vmem %s45_s22, 16  ;;  %s567_s16 = scalar_lea.vmem %s45_s22, 32 }
  0x3c   :  { %p564_p13 = scmp.ne.s32.totalorder %s45_s22, %s563_s15  ;;  %p568_p0 = scmp.lt.s32.totalorder %s45_s22, %s45_s22 }
  0x3d   :  { %p569_p1 = scmp.lt.s32.totalorder %s567_s16, %s563_s15 }
  0x3f   :  { %p570_p2 = por %p569_p1, %p568_p0 }
  0x41   :  { %p571_p3 = pnand %p570_p2, %p564_p13 }
  0x43   :  { %574 = shalt.err (!%p571_p3)
}
  0x44   :  { %47 = dma.hbm_to_vmem [thread:$0]  %s759_s2, 16, %s45_s22, [#allocation7]  }
  0x45   :  { %s633_s6 = smov [#allocation11]   ;;  %s575_s19 = scalar_lea.hbm %s761_s4, 16 }
  0x46   :  { %s66_s1 = sshll.u32 %s633_s6, 4  ;;  %p576_p4 = scmp.ne.s32.totalorder %s761_s4, %s575_s19  ;;  %s67_s1 = int_to_ptr.vmem [resolvable:$true] %s66_s1 }
  0x47   :  { %p579_p5 = scmp.lt.u32.totalorder %s575_s19, %s761_s4 }
  0x49   :  { %p581_p6 = pnand %p579_p5, %p576_p4 }
  0x4b   :  { %584 = shalt.err (!%p581_p6)
}
  0x4c   :  { %s585_s26 = scalar_lea.vmem %s67_s1, 16  ;;  %s589_s2 = scalar_lea.vmem %s67_s1, 32 }
  0x4d   :  { %p586_p7 = scmp.ne.s32.totalorder %s67_s1, %s585_s26  ;;  %p590_p8 = scmp.lt.s32.totalorder %s67_s1, %s67_s1 }
  0x4e   :  { %p591_p9 = scmp.lt.s32.totalorder %s589_s2, %s585_s26 }
  0x50   :  { %p592_p10 = por %p591_p9, %p590_p8 }
  0x52   :  { %p593_p11 = pnand %p592_p10, %p586_p7 }
  0x54   :  { %596 = shalt.err (!%p593_p11)
}
  0x55   :  { %69 = dma.hbm_to_vmem [thread:$0]  %s761_s4, 16, %s67_s1, [#allocation10]  }
  0x56   :  { %619 = dma.done.wait [#allocation4], 128  }
  0x57   :  { %620 = vsyncadd [#allocation4], 4294967168 }
  0x58   :  { %621 = dma.done.wait [#allocation7], 1040  }
  0x59   :  { %622 = vsyncadd [#allocation7], 4294966256 }
  0x5a   :  { %623 = dma.done.wait [#allocation10], 1040  }
  0x5b   :  { %624 = vsyncadd [#allocation10], 4294966256  ;;  %v634_v0 = vmov 0.0   ;;  %vm635_vm0 = vmmov 0   ;;  %v466_v1 = vld [vmem:[#allocation6] sm:$0xff]   ;;  %v467_v2 = vld [vmem:[#allocation6 + $0x8] sm:$0xff]  }
  0x5c   :  { %414 = vmatprep.subr.bf16.mxu0 %v634_v0  ;;  %430 = vmatprep.mubr.msk.bf16.mxu0 %vm635_vm0, %v634_v0  ;;  %v468_v3 = vld [vmem:[#allocation6 + $0x10] sm:$0xff]   ;;  %v469_v4 = vld [vmem:[#allocation6 + $0x18] sm:$0xff]   ;;  %v470_v5 = vld [vmem:[#allocation6 + $0x20] sm:$0xff]   ;;  %s636_s4 = smov [#allocation12]  }
  0x5d   :  { %434 = vmatprep.subr.bf16.mxu1 %v634_v0  ;;  %450 = vmatprep.mubr.msk.bf16.mxu1 %vm635_vm0, %v634_v0  ;;  %v471_v6 = vld [vmem:[#allocation6 + $0x28] sm:$0xff]   ;;  %v472_v7 = vld [vmem:[#allocation6 + $0x30] sm:$0xff]   ;;  %v473_v8 = vld [vmem:[#allocation6 + $0x38] sm:$0xff]   ;;  %s363_s28 = sshll.u32 %s636_s4, 4  ;;  %s364_s28 = int_to_ptr.vmem [resolvable:$true] %s363_s28 }
  0x5e   :  { %415 = vmatpush3.bf16.msra.mxu0 %v466_v1  ;;  %v474_v9 = vld [vmem:[#allocation3] sm:$0xff]   ;;  %v475_v10 = vld [vmem:[#allocation9] sm:$0xff]   ;;  %v476_v11 = vld [vmem:[#allocation9 + $0x8] sm:$0xff]   ;;  %s597_s29 = scalar_lea.vmem %s364_s28, 256  ;;  %p602_p13 = scmp.lt.s32.totalorder %s364_s28, %s364_s28 }
  0x5f   :  { %416 = vmatprep.subr.bf16.mxu0 %v634_v0  ;;  %435 = vmatpush3.bf16.msra.mxu1 %v475_v10  ;;  %v477_v12 = vld [vmem:[#allocation9 + $0x10] sm:$0xff]   ;;  %v478_v13 = vld [vmem:[#allocation9 + $0x18] sm:$0xff]   ;;  %v479_v14 = vld [vmem:[#allocation9 + $0x20] sm:$0xff]   ;;  %p598_p12 = scmp.ne.s32.totalorder %s364_s28, %s597_s29  ;;  %p603_p0 = scmp.lt.s32.totalorder %s597_s29, %s597_s29 }
  0x60   :  { %436 = vmatprep.subr.bf16.mxu1 %v634_v0  ;;  %v480_v15 = vld [vmem:[#allocation9 + $0x28] sm:$0xff]   ;;  %v481_v16 = vld [vmem:[#allocation9 + $0x30] sm:$0xff]   ;;  %v482_v17 = vld [vmem:[#allocation9 + $0x38] sm:$0xff]  }
  0x61   :  { %v377_v18 = vld [vmem:[#allocation8] ss:$0 sm:$0xff]  ;;  %v395_v44 = vld [vmem:[#allocation11] ss:$0 sm:$0xff]  ;;  %p604_p1 = por %p603_p0, %p602_p13 }
  0x62   :  { %417 = vmatpush3.bf16.msra.mxu0 %v467_v2 }
  0x63   :  { %418 = vmatprep.subr.bf16.mxu0 %v634_v0  ;;  %437 = vmatpush3.bf16.msra.mxu1 %v476_v11  ;;  %p605_p2 = pnand %p604_p1, %p598_p12 }
  0x64   :  { %438 = vmatprep.subr.bf16.mxu1 %v634_v0 }
  0x66   :  { %419 = vmatpush3.bf16.msra.mxu0 %v468_v3 }
  0x67   :  { %420 = vmatprep.subr.bf16.mxu0 %v634_v0  ;;  %439 = vmatpush3.bf16.msra.mxu1 %v477_v12 }
  0x68   :  { %440 = vmatprep.subr.bf16.mxu1 %v634_v0 }
  0x6a   :  { %421 = vmatpush3.bf16.msra.mxu0 %v469_v4 }
  0x6b   :  { %422 = vmatprep.subr.bf16.mxu0 %v634_v0  ;;  %441 = vmatpush3.bf16.msra.mxu1 %v478_v13 }
  0x6c   :  { %442 = vmatprep.subr.bf16.mxu1 %v634_v0 }
  0x6e   :  { %423 = vmatpush3.bf16.msra.mxu0 %v470_v5 }
  0x6f   :  { %424 = vmatprep.subr.bf16.mxu0 %v634_v0  ;;  %443 = vmatpush3.bf16.msra.mxu1 %v479_v14 }
  0x70   :  { %444 = vmatprep.subr.bf16.mxu1 %v634_v0 }
  0x72   :  { %425 = vmatpush3.bf16.msra.mxu0 %v471_v6 }
  0x73   :  { %426 = vmatprep.subr.bf16.mxu0 %v634_v0  ;;  %445 = vmatpush3.bf16.msra.mxu1 %v480_v15 }
  0x74   :  { %446 = vmatprep.subr.bf16.mxu1 %v634_v0 }
  0x76   :  { %427 = vmatpush3.bf16.msra.mxu0 %v472_v7 }
  0x77   :  { %428 = vmatprep.subr.bf16.mxu0 %v634_v0  ;;  %447 = vmatpush3.bf16.msra.mxu1 %v481_v16 }
  0x78   :  { %448 = vmatprep.subr.bf16.mxu1 %v634_v0 }
  0x7a   :  { %429 = vmatpush3.bf16.msra.mxu0 %v473_v8 }
  0x7b   :  { %449 = vmatpush3.bf16.msra.mxu1 %v482_v17 }
  0x7d   :  { %431 = vmatmul.mubr.bf16.vlgmr.msra.gmra.mrb[0].mxu0 %v474_v9 }
 0x150   :  { %v205_v19 = vpop.f32.mrb[0].mxu0 }
 0x151   :  { %v206_v20 = vadd.f32 %v377_v18, %v205_v19  ;;  %v432_v21 = vpop.f32.mrb[1].mxu0 }
 0x152   :  { %v208_v22 = vpop.f32.mrb[2].mxu0 }
 0x153   :  { %v214_v23 = vmul.f32 0.044715, %v206_v20  ;;  %v209_v24 = vadd.f32 %v377_v18, %v208_v22  ;;  %v433_v25 = vpop.f32.mrb[3].mxu0  ;;  %v212_v38 = vmul.f32 0.5, %v206_v20 }
 0x155   :  { %v216_v26 = vmul.f32 %v214_v23, %v206_v20  ;;  %v215_v27 = vmul.f32 0.044715, %v209_v24  ;;  %v213_v39 = vmul.f32 0.5, %v209_v24 }
 0x157   :  { %v218_v28 = vmul.f32 %v216_v26, %v206_v20  ;;  %v217_v29 = vmul.f32 %v215_v27, %v209_v24 }
 0x159   :  { %v219_v30 = vmul.f32 %v217_v29, %v209_v24  ;;  %v220_v31 = vadd.f32 %v218_v28, %v206_v20 }
 0x15b   :  { %v221_v32 = vadd.f32 %v219_v30, %v209_v24  ;;  %v222_v33 = vmul.f32 0.7978846, %v220_v31 }
 0x15d   :  { %v223_v34 = vmul.f32 0.7978846, %v221_v32  ;;  %483 = vtanh.f32 %v222_v33 }
 0x15f   :  { %485 = vtanh.f32 %v223_v34 }
 0x167   :  { %v484_v35 = vpop.eup %483 }
 0x168   :  { %v226_v36 = vadd.f32 1.0, %v484_v35 }
 0x169   :  { %v486_v37 = vpop.eup %485 }
 0x16a   :  { %v227_v40 = vadd.f32 1.0, %v486_v37  ;;  %v228_v41 = vmul.f32 %v226_v36, %v212_v38 }
 0x16c   :  { %v229_v42 = vmul.f32 %v227_v40, %v213_v39 }
 0x16e   :  { %v232_v43 = vpack.c.bf16 %v229_v42, %v228_v41 }
 0x170   :  { %451 = vmatmul.mubr.bf16.vlgmr.msra.gmra.mrb[0].mxu1 %v232_v43 }
 0x243   :  { %v331_v45 = vpop.f32.mrb[0].mxu1 }
 0x244   :  { %v354_v46 = vadd.f32 %v395_v44, %v331_v45  ;;  %v452_v47 = vpop.f32.mrb[1].mxu1 }
 0x245   :  { %v334_v48 = vpop.f32.mrb[2].mxu1 }
 0x246   :  { %356 = vst [vmem:[#allocation12] sm:$0xff] %v354_v46  ;;  %v355_v49 = vadd.f32 %v395_v44, %v334_v48  ;;  %v453_v50 = vpop.f32.mrb[3].mxu1 }
 0x248   :  { %357 = vst [vmem:[#allocation12 + $0x8] sm:$0xff] %v355_v49 }
 0x249   :  { %608 = shalt.err (!%p605_p2)
}
 0x24a   :  { %s609_s7 = scalar_lea.hbm %s762_s5, 256 }
 0x24b   :  { %p610_p3 = scmp.ne.s32.totalorder %s762_s5, %s609_s7  ;;  %p613_p4 = scmp.lt.u32.totalorder %s609_s7, %s762_s5 }
 0x24d   :  { %p615_p5 = pnand %p613_p4, %p610_p3 }
 0x24f   :  { %618 = shalt.err (!%p615_p5)
}
 0x250   :  { %s637_s12 = smov 128   ;;  %s638_s13 = smov 8  }
 0x251   :  { %369 = dma.vmem_to_hbm [thread:$0]  %s364_s28, 256, %s762_s5, [#allocation5], %s637_s12, %s637_s12, %s638_s13  }
 0x252   :  { %625 = dma.done.wait [#allocation5], 256  }
 0x253   :  { %626 = vsyncadd [#allocation5], 4294967040 }
 0x254   :  { %373 = vsyncpa [#allocation4], 1 }
 0x255   :  { %374 = vsyncpa [#allocation7], 1 }
 0x256   :  { %375 = vsyncpa [#allocation10], 1 }
 0x257   :  { %376 = vsyncpa [#allocation5], 1 }

</bundles_post_ra>
